<compile_context>
chip_gen: v7x
topology: tpu7x:2x2x1
jax: 0.10.0
libtpu: 0.0.40
codegen_flags: <defaults>
</compile_context>

<pallas_src>
import functools

import jax
import jax.numpy as jnp
from jax.experimental import pallas as pl
from jax.experimental.pallas import tpu as pltpu

_VMEM_LIMIT = 32 * 1024 * 1024  # safe scoped-VMEM budget on v5e / v6e / v7x


def _pick_tile(n, cap, multiple=1):
    """Largest divisor of n that is <= cap and a multiple of `multiple`,
    preferring a grid length >= 2 (megacore / 2-TC sharding on v7x)."""
    cands = [t for t in range(1, min(n, cap) + 1)
             if n % t == 0 and t % multiple == 0]
    if not cands:
        return n  # full extent is always a legal block shape
    pref = [t for t in cands if n // t >= 2]
    return max(pref) if pref else max(cands)


# ----------------------------------------------------------------------------------
# Kernel 1: fused conv_map (1x1 conv + folded BN + LeakyReLU) + q/k/v 1x1 projections
# ----------------------------------------------------------------------------------
def fused_convmap_qkv_kernel(x_ref, wmap_ref, shift_ref, wq_ref, wk_ref, wv_ref,
                             q_ref, k_ref, v_ref):
    x = x_ref[...]                                               # (tm, 2c)  [noisy|aux]
    # conv_map: 1x1 conv + BatchNorm (eval, folded into weights/shift) + LeakyReLU(0.2)
    y = jnp.dot(x, wmap_ref[...], preferred_element_type=jnp.float32) + shift_ref[...]
    y = jnp.where(y >= 0.0, y, 0.2 * y)                          # n_aux, (tm, c)
    # 1x1 projections (q-scale folded into wq; wv zero-padded so it reads only noisy)
    q_ref[...] = jnp.dot(y, wq_ref[...], preferred_element_type=jnp.float32).astype(q_ref.dtype)
    k_ref[...] = jnp.dot(y, wk_ref[...], preferred_element_type=jnp.float32).astype(k_ref.dtype)
    v_ref[...] = jnp.dot(x, wv_ref[...], preferred_element_type=jnp.float32).astype(v_ref.dtype)


def fused_convmap_qkv(x_flat, w_map, shift, wq, wk, wv_pad, *, tm):
    M, C2 = x_flat.shape
    C = w_map.shape[1]
    const = lambda i: (0, 0)
    row = lambda i: (i, 0)
    out_sds = jax.ShapeDtypeStruct((M, C), x_flat.dtype)
    return pl.pallas_call(
        fused_convmap_qkv_kernel,
        out_shape=(out_sds, out_sds, out_sds),
        grid_spec=pltpu.PrefetchScalarGridSpec(
            num_scalar_prefetch=0,
            grid=(M // tm,),
            in_specs=[
                pl.BlockSpec((tm, C2), row),
                pl.BlockSpec((C2, C), const),
                pl.BlockSpec((1, C), const),
                pl.BlockSpec((C, C), const),
                pl.BlockSpec((C, C), const),
                pl.BlockSpec((C2, C), const),
            ],
            out_specs=(
                pl.BlockSpec((tm, C), row),
                pl.BlockSpec((tm, C), row),
                pl.BlockSpec((tm, C), row),
            ),
        ),
        compiler_params=pltpu.CompilerParams(
            dimension_semantics=("parallel",),
            vmem_limit_bytes=_VMEM_LIMIT),
    )(x_flat, w_map, shift, wq, wk, wv_pad)


# ----------------------------------------------------------------------------------
# Kernel 2: rel-pos bias + multi-head block-halo attention, nb blocks per grid step
# ----------------------------------------------------------------------------------
def afgsa_attn_kernel(qp_ref, kp_ref, vp_ref, rel_ref, o_ref, *, num_heads, head_ch):
    q_all = qp_ref[...]                               # (nb, block^2, c), already scaled
    k_all = kp_ref[...] + rel_ref[...][None, :, :]    # (nb, a, c) + rel-pos bias
    v_all = vp_ref[...]                               # (nb, a, c)
    for h in range(num_heads):                        # short static loop over heads
        lo, hi = h * head_ch, (h + 1) * head_ch
        qh = q_all[:, :, lo:hi]                       # (nb, block^2, d)
        kh = k_all[:, :, lo:hi]                       # (nb, a, d)
        vh = v_all[:, :, lo:hi]
        sim = jnp.einsum('nqd,nkd->nqk', qh, kh,
                         preferred_element_type=jnp.float32)      # (nb, block^2, a)
        sim = sim - jnp.max(sim, axis=-1, keepdims=True)
        p = jnp.exp(sim)
        attn = p * pl.reciprocal(jnp.sum(p, axis=-1, keepdims=True), approx=True)
        out_h = jnp.einsum('nqk,nkd->nqd', attn, vh,
                           preferred_element_type=jnp.float32)    # (nb, block^2, d)
        # write head output directly into its channel slice (channel order = (head, d))
        o_ref[:, :, lo:hi] = out_h.astype(o_ref.dtype)


def afgsa_attention(qp, kp, vp, rel_full, *, nb, num_heads, head_ch):
    Bb, bs2, c = qp.shape
    a = kp.shape[1]
    kernel = functools.partial(afgsa_attn_kernel, num_heads=num_heads, head_ch=head_ch)
    return pl.pallas_call(
        kernel,
        out_shape=jax.ShapeDtypeStruct((Bb, bs2, c), qp.dtype),
        grid_spec=pltpu.PrefetchScalarGridSpec(
            num_scalar_prefetch=0,
            grid=(Bb // nb,),
            in_specs=[
                pl.BlockSpec((nb, bs2, c), lambda i: (i, 0, 0)),
                pl.BlockSpec((nb, a, c), lambda i: (i, 0, 0)),
                pl.BlockSpec((nb, a, c), lambda i: (i, 0, 0)),
                pl.BlockSpec((a, c), lambda i: (0, 0)),
            ],
            out_specs=pl.BlockSpec((nb, bs2, c), lambda i: (i, 0, 0)),
        ),
        compiler_params=pltpu.CompilerParams(
            dimension_semantics=("parallel",),
            vmem_limit_bytes=_VMEM_LIMIT),
    )(qp, kp, vp, rel_full)


# ----------------------------------------------------------------------------------
# JAX glue: patch extraction (= F.unfold with zero padding), rearranges, param folding
# ----------------------------------------------------------------------------------
def extract_blocks(x, block):
    # x: (b, h, w, c) -> (b * nh * nw, block*block, c), batch order (b, nh, nw)
    b, h, w, c = x.shape
    nh, nw = h // block, w // block
    x = x.reshape(b, nh, block, nw, block, c).transpose(0, 1, 3, 2, 4, 5)
    return x.reshape(b * nh * nw, block * block, c)


def extract_halo_patches(x, block, halo):
    # zero-pad by halo, windows of size block+2*halo at stride block (== F.unfold order)
    b, h, w, c = x.shape
    nh, nw = h // block, w // block
    ks = block + 2 * halo
    xp = jnp.pad(x, ((0, 0), (halo, halo), (halo, halo), (0, 0)))
    patches = []
    for i in range(nh):
        for j in range(nw):
            p = xp[:, i * block:i * block + ks, j * block:j * block + ks, :]
            patches.append(p.reshape(b, ks * ks, c))
    p = jnp.stack(patches, axis=1)              # (b, L, ks*ks, c), L row-major
    return p.reshape(b * nh * nw, ks * ks, c)


def afgsa_forward(noisy_nchw, aux_nchw, params, *, block=8, halo=3, heads=4,
                  tm_cap=1024, nb_cap=16):
    b, c, h, w = noisy_nchw.shape
    assert c % heads == 0 and h % block == 0 and w % block == 0
    head_ch = c // heads
    ks = block + 2 * halo
    a = ks * ks
    d2 = head_ch // 2

    noisy = jnp.transpose(noisy_nchw, (0, 2, 3, 1))  # NHWC
    aux = jnp.transpose(aux_nchw, (0, 2, 3, 1))

    # --- fold conv bias + BatchNorm (eval) into the conv_map weights; fold the q
    #     head-scale into Wq; zero-pad Wv so it consumes the [noisy|aux] concat ---
    bn_scale = params["bn_gamma"] / jnp.sqrt(params["bn_var"] + 1e-5)
    w_map_f = params["w_map"] * bn_scale[None, :]
    shift = (params["b_map"] * bn_scale + params["bn_beta"]
             - params["bn_mean"] * bn_scale)[None, :]
    wq_s = params["wq"] * (head_ch ** -0.5)
    wv_pad = jnp.concatenate([params["wv"], jnp.zeros_like(params["wv"])], axis=0)

    # --- kernel 1: fused conv_map + q/k/v projections (single pass over pixels) ---
    M = b * h * w
    x_flat = jnp.concatenate([noisy, aux], axis=-1).reshape(M, 2 * c)
    tm = _pick_tile(M, tm_cap, multiple=8)
    q_img, k_img, v_img = fused_convmap_qkv(x_flat, w_map_f, shift, wq_s,
                                            params["wk"], wv_pad, tm=tm)
    q_img = q_img.reshape(b, h, w, c)
    k_img = k_img.reshape(b, h, w, c)
    v_img = v_img.reshape(b, h, w, c)

    # --- patch extraction on the already-projected maps ---
    # TODO(synk): replace the unfold materialization with in-kernel halo DMA
    # (memory_space=pl.ANY + pltpu.make_async_copy) to cut the ~(ks/block)^2 HBM dup.
    qp = extract_blocks(q_img, block)               # (Bb, block^2, c)
    kp = extract_halo_patches(k_img, block, halo)   # (Bb, ks^2, c)
    vp = extract_halo_patches(v_img, block, halo)   # (Bb, ks^2, c)

    # --- relative position bias (identical across heads), channel order (head, d) ---
    rel_h = params["rel_h"].reshape(ks, d2)
    rel_w = params["rel_w"].reshape(ks, d2)
    rel = jnp.concatenate(
        [jnp.broadcast_to(rel_h[:, None, :], (ks, ks, d2)),
         jnp.broadcast_to(rel_w[None, :, :], (ks, ks, d2))], axis=-1)
    rel_full = jnp.tile(rel.reshape(a, head_ch), (1, heads))   # (ks^2, c)

    # --- kernel 2: attention, nb (batch, block) tiles per grid step ---
    Bb = qp.shape[0]
    nb = _pick_tile(Bb, nb_cap)
    out_blocks = afgsa_attention(qp, kp, vp, rel_full, nb=nb,
                                 num_heads=heads, head_ch=head_ch)

    # --- rearrange back to (b, c, h, w) ---
    nh, nw = h // block, w // block
    out = out_blocks.reshape(b, nh, nw, block, block, c)
    out = out.transpose(0, 1, 3, 2, 4, 5).reshape(b, h, w, c)
    return jnp.transpose(out, (0, 3, 1, 2))


# ----------------------------------------------------------------------------------
# Deterministic synthetic parameters (PyTorch-shaped, then folded to matmul weights)
# ----------------------------------------------------------------------------------
def init_params(ch, block, halo, heads, key):
    ks = block + 2 * halo
    head_ch = ch // heads
    k = jax.random.split(key, 8)
    w_map = jax.random.normal(k[0], (ch, 2 * ch, 1, 1), jnp.float32) * 0.1  # Conv2d weight
    b_map = jax.random.normal(k[1], (ch,), jnp.float32) * 0.1
    wq = jax.random.normal(k[2], (ch, ch, 1, 1), jnp.float32) * 0.1
    wk = jax.random.normal(k[3], (ch, ch, 1, 1), jnp.float32) * 0.1
    wv = jax.random.normal(k[4], (ch, ch, 1, 1), jnp.float32) * 0.1
    rel_h = jax.random.normal(k[5], (1, ks, 1, head_ch // 2), jnp.float32)
    rel_w = jax.random.normal(k[6], (1, 1, ks, head_ch // 2), jnp.float32)
    return {
        # 1x1 conv weights folded to (in_ch, out_ch) matrices: y = x @ W
        "w_map": w_map[:, :, 0, 0].T,
        "b_map": b_map,
        "wq": wq[:, :, 0, 0].T,
        "wk": wk[:, :, 0, 0].T,
        "wv": wv[:, :, 0, 0].T,
        "rel_h": rel_h,
        "rel_w": rel_w,
        # BatchNorm2d fresh-module defaults (inference/eval-mode application)
        "bn_gamma": jnp.ones((ch,), jnp.float32),
        "bn_beta": jnp.zeros((ch,), jnp.float32),
        "bn_mean": jnp.zeros((ch,), jnp.float32),
        "bn_var": jnp.ones((ch,), jnp.float32),
    }


if __name__ == "__main__":
    B, CH, H, W = 2, 32, 16, 16
    BLOCK, HALO, HEADS = 8, 3, 4

    key = jax.random.PRNGKey(0)
    k_noisy, k_aux, k_params = jax.random.split(key, 3)
    noisy = jax.random.normal(k_noisy, (B, CH, H, W), jnp.float32)   # NCHW like PyTorch
    aux = jax.random.normal(k_aux, (B, CH, H, W), jnp.float32)
    params = init_params(CH, BLOCK, HALO, HEADS, k_params)

    out = afgsa_forward(noisy, aux, params, block=BLOCK, halo=HALO, heads=HEADS)
    out = jax.block_until_ready(out)
    assert out.shape == (B, CH, H, W), out.shape
    print("KERNEL_OK")
</pallas_src>

<mosaic_0001>
module attributes {stable_mosaic.version = 11 : i64} {
  func.func @fused_convmap_qkv_kernel(%arg0: i32, %arg1: memref<256x64xf32, #tpu.memory_space<vmem>>, %arg2: memref<64x32xf32, #tpu.memory_space<vmem>>, %arg3: memref<1x32xf32, #tpu.memory_space<vmem>>, %arg4: memref<32x32xf32, #tpu.memory_space<vmem>>, %arg5: memref<32x32xf32, #tpu.memory_space<vmem>>, %arg6: memref<64x32xf32, #tpu.memory_space<vmem>>, %arg7: memref<256x32xf32, #tpu.memory_space<vmem>>, %arg8: memref<256x32xf32, #tpu.memory_space<vmem>>, %arg9: memref<256x32xf32, #tpu.memory_space<vmem>>) attributes {dimension_semantics = [#tpu.dimension_semantics<parallel>], iteration_bounds = array<i64: 2>, scalar_prefetch = 0 : i64, scratch_operands = 0 : i64, tpu.core_type = #tpu.core_type<tc>, window_params = [{transform_indices = @transform_0, window_bounds = array<i64: 256, 64>}, {pipeline_mode = #tpu.pipeline_mode<synchronous>, transform_indices = @transform_1, window_bounds = array<i64: 64, 32>}, {pipeline_mode = #tpu.pipeline_mode<synchronous>, transform_indices = @transform_2, window_bounds = array<i64: 1, 32>}, {pipeline_mode = #tpu.pipeline_mode<synchronous>, transform_indices = @transform_3, window_bounds = array<i64: 32, 32>}, {pipeline_mode = #tpu.pipeline_mode<synchronous>, transform_indices = @transform_4, window_bounds = array<i64: 32, 32>}, {pipeline_mode = #tpu.pipeline_mode<synchronous>, transform_indices = @transform_5, window_bounds = array<i64: 64, 32>}, {transform_indices = @transform_6, window_bounds = array<i64: 256, 32>}, {transform_indices = @transform_7, window_bounds = array<i64: 256, 32>}, {transform_indices = @transform_8, window_bounds = array<i64: 256, 32>}]} {
    %c0 = arith.constant 0 : index
    %c0_0 = arith.constant 0 : index
    %0 = vector.load %arg1[%c0, %c0_0] : memref<256x64xf32, #tpu.memory_space<vmem>>, vector<256x64xf32>
    %c0_1 = arith.constant 0 : index
    %c0_2 = arith.constant 0 : index
    %1 = vector.load %arg2[%c0_1, %c0_2] : memref<64x32xf32, #tpu.memory_space<vmem>>, vector<64x32xf32>
    %cst = arith.constant dense<0.000000e+00> : vector<256x32xf32>
    %2 = tpu.matmul %0, %1, %cst {dimension_numbers = #tpu.dot_dimension_numbers<[1], [0], [0], [1], [0, 0, 1, 1], [], []>} : vector<256x64xf32>, vector<64x32xf32>, vector<256x32xf32> -> vector<256x32xf32>
    %c0_3 = arith.constant 0 : index
    %c0_4 = arith.constant 0 : index
    %3 = vector.load %arg3[%c0_3, %c0_4] : memref<1x32xf32, #tpu.memory_space<vmem>>, vector<1x32xf32>
    %4 = vector.broadcast %3 : vector<1x32xf32> to vector<256x32xf32>
    %5 = arith.addf %2, %4 : vector<256x32xf32>
    %cst_5 = arith.constant 0.000000e+00 : f32
    %6 = vector.broadcast %cst_5 : f32 to vector<256x32xf32>
    %7 = arith.cmpf oge, %5, %6 : vector<256x32xf32>
    %cst_6 = arith.constant 2.000000e-01 : f32
    %8 = vector.broadcast %cst_6 : f32 to vector<256x32xf32>
    %9 = arith.mulf %8, %5 : vector<256x32xf32>
    %10 = arith.select %7, %5, %9 : vector<256x32xi1>, vector<256x32xf32>
    %c0_7 = arith.constant 0 : index
    %c0_8 = arith.constant 0 : index
    %11 = vector.load %arg4[%c0_7, %c0_8] : memref<32x32xf32, #tpu.memory_space<vmem>>, vector<32x32xf32>
    %cst_9 = arith.constant dense<0.000000e+00> : vector<256x32xf32>
    %12 = tpu.matmul %10, %11, %cst_9 {dimension_numbers = #tpu.dot_dimension_numbers<[1], [0], [0], [1], [0, 0, 1, 1], [], []>} : vector<256x32xf32>, vector<32x32xf32>, vector<256x32xf32> -> vector<256x32xf32>
    %c0_10 = arith.constant 0 : index
    %c0_11 = arith.constant 0 : index
    %13 = vector.load %arg7[%c0_10, %c0_11] : memref<256x32xf32, #tpu.memory_space<vmem>>, vector<256x32xf32>
    tpu.vector_store %arg7[%c0_10, %c0_11], %12 {strides = array<i32>} : memref<256x32xf32, #tpu.memory_space<vmem>>, vector<256x32xf32>,
    %c0_12 = arith.constant 0 : index
    %c0_13 = arith.constant 0 : index
    %14 = vector.load %arg5[%c0_12, %c0_13] : memref<32x32xf32, #tpu.memory_space<vmem>>, vector<32x32xf32>
    %cst_14 = arith.constant dense<0.000000e+00> : vector<256x32xf32>
    %15 = tpu.matmul %10, %14, %cst_14 {dimension_numbers = #tpu.dot_dimension_numbers<[1], [0], [0], [1], [0, 0, 1, 1], [], []>} : vector<256x32xf32>, vector<32x32xf32>, vector<256x32xf32> -> vector<256x32xf32>
    %c0_15 = arith.constant 0 : index
    %c0_16 = arith.constant 0 : index
    %16 = vector.load %arg8[%c0_15, %c0_16] : memref<256x32xf32, #tpu.memory_space<vmem>>, vector<256x32xf32>
    tpu.vector_store %arg8[%c0_15, %c0_16], %15 {strides = array<i32>} : memref<256x32xf32, #tpu.memory_space<vmem>>, vector<256x32xf32>,
    %c0_17 = arith.constant 0 : index
    %c0_18 = arith.constant 0 : index
    %17 = vector.load %arg6[%c0_17, %c0_18] : memref<64x32xf32, #tpu.memory_space<vmem>>, vector<64x32xf32>
    %cst_19 = arith.constant dense<0.000000e+00> : vector<256x32xf32>
    %18 = tpu.matmul %0, %17, %cst_19 {dimension_numbers = #tpu.dot_dimension_numbers<[1], [0], [0], [1], [0, 0, 1, 1], [], []>} : vector<256x64xf32>, vector<64x32xf32>, vector<256x32xf32> -> vector<256x32xf32>
    %c0_20 = arith.constant 0 : index
    %c0_21 = arith.constant 0 : index
    %19 = vector.load %arg9[%c0_20, %c0_21] : memref<256x32xf32, #tpu.memory_space<vmem>>, vector<256x32xf32>
    tpu.vector_store %arg9[%c0_20, %c0_21], %18 {strides = array<i32>} : memref<256x32xf32, #tpu.memory_space<vmem>>, vector<256x32xf32>,
    return
  }
  func.func @transform_0(%arg0: i32) -> (i32, i32) {
    %c0_i32 = arith.constant 0 : i32
    %c0_i32_0 = arith.constant 0 : i32
    return %arg0, %c0_i32 : i32, i32
  }
  func.func @transform_1(%arg0: i32) -> (i32, i32) {
    %c0_i32 = arith.constant 0 : i32
    %c0_i32_0 = arith.constant 0 : i32
    %c0_i32_1 = arith.constant 0 : i32
    return %c0_i32, %c0_i32_0 : i32, i32
  }
  func.func @transform_2(%arg0: i32) -> (i32, i32) {
    %c0_i32 = arith.constant 0 : i32
    %c0_i32_0 = arith.constant 0 : i32
    %c0_i32_1 = arith.constant 0 : i32
    return %c0_i32, %c0_i32_0 : i32, i32
  }
  func.func @transform_3(%arg0: i32) -> (i32, i32) {
    %c0_i32 = arith.constant 0 : i32
    %c0_i32_0 = arith.constant 0 : i32
    %c0_i32_1 = arith.constant 0 : i32
    return %c0_i32, %c0_i32_0 : i32, i32
  }
  func.func @transform_4(%arg0: i32) -> (i32, i32) {
    %c0_i32 = arith.constant 0 : i32
    %c0_i32_0 = arith.constant 0 : i32
    %c0_i32_1 = arith.constant 0 : i32
    return %c0_i32, %c0_i32_0 : i32, i32
  }
  func.func @transform_5(%arg0: i32) -> (i32, i32) {
    %c0_i32 = arith.constant 0 : i32
    %c0_i32_0 = arith.constant 0 : i32
    %c0_i32_1 = arith.constant 0 : i32
    return %c0_i32, %c0_i32_0 : i32, i32
  }
  func.func @transform_6(%arg0: i32) -> (i32, i32) {
    %c0_i32 = arith.constant 0 : i32
    %c0_i32_0 = arith.constant 0 : i32
    return %arg0, %c0_i32 : i32, i32
  }
  func.func @transform_7(%arg0: i32) -> (i32, i32) {
    %c0_i32 = arith.constant 0 : i32
    %c0_i32_0 = arith.constant 0 : i32
    return %arg0, %c0_i32 : i32, i32
  }
  func.func @transform_8(%arg0: i32) -> (i32, i32) {
    %c0_i32 = arith.constant 0 : i32
    %c0_i32_0 = arith.constant 0 : i32
    return %arg0, %c0_i32 : i32, i32
  }
}

</mosaic_0001>

<bundles_post_ra>
// kernel: tpu_custom_call.1
= control target key start
LH: loop header
LB: loop body
LE: loop exit
PB: predicated region body
PF: predicated region fallthrough
CT: control target
= control target key end

     0   :  { %s2462_s27 = smov 0   ;;  %s3220_s0 = inlined_call_operand.vmem [shape: f32[512,64], index: 0, kind: input, shape index: {}]   ;;  %s3221_s1 = inlined_call_operand.vmem [shape: f32[64,32], index: 1, kind: input, shape index: {}]   ;;  %s3222_s2 = inlined_call_operand.vmem [shape: f32[1,32], index: 2, kind: input, shape index: {}]   ;;  %s3223_s3 = inlined_call_operand.vmem [shape: f32[32,32], index: 3, kind: input, shape index: {}]   ;;  %s3224_s4 = inlined_call_operand.vmem [shape: f32[32,32], index: 4, kind: input, shape index: {}]   ;;  %s3225_s5 = inlined_call_operand.vmem [shape: f32[64,32], index: 5, kind: input, shape index: {}]   ;;  %s3226_s6 = inlined_call_operand.vmem [shape: f32[512,32], index: 6, kind: output, shape index: {0}]   ;;  %s3227_s7 = inlined_call_operand.vmem [shape: f32[512,32], index: 7, kind: output, shape index: {1}]   ;;  %s3228_s8 = inlined_call_operand.vmem [shape: f32[512,32], index: 8, kind: output, shape index: {2}]  }
   0x1 LB: > { %s1809_s28 = sadd.s32 4294967295, %s2415_s27   ;;  %p1813_p0 = scmp.ge.s32.totalorder %s2415_s27, 1  ;;  %s2415_s27 = sphi %s2462_s27, %s19_s27  }
   0x2   : > { %p268_p1 = scmp.lt.s32.totalorder %s2415_s27, 3 }
   0x4   : > { %p269_p2 = pnand %p1813_p0, %p268_p1 }
   0x5   : > { %v368_v0 = vld [vmem:[%s3221_s1] sm:$0xff] (!%p269_p2)  ;;  %v369_v1 = vld [vmem:[%s3221_s1 + $0x8] sm:$0xff] (!%p269_p2)  ;;  %v370_v2 = vld [vmem:[%s3221_s1 + $0x10] sm:$0xff] (!%p269_p2)  ;;  %s1814_s13 = sshll.u32 (!%p269_p2), %s1809_s28, 5  ;;  %vm383_vm0 = vcmask (!%p269_p2), 523264   ;;  %vm805_vm3 = vcmask (!%p269_p2), 261120  }
   0x6   : > { %272 = sbr.rel (%p269_p2) target bundleno = 585 (0x249), region = 44  ;;  %v2345_v3 = vpack.c.bf16 (!%p269_p2), %v369_v1, %v368_v0  ;;  %v371_v4 = vld [vmem:[%s3221_s1 + $0x18] sm:$0xff] (!%p269_p2)  ;;  %p313_p3 = scmp.lt.s32.totalorder (!%p269_p2), %s1814_s13, 63  ;;  %v372_v6 = vld [vmem:[%s3221_s1 + $0x20] sm:$0xff] (!%p269_p2)  ;;  %v373_v7 = vld [vmem:[%s3221_s1 + $0x28] sm:$0xff] (!%p269_p2) }
   0x7   : > { %v2349_v5 = vpack.c.bf16 (!%p269_p2), %v371_v4, %v370_v2  ;;  %v801_v8 = vld [vmem:[%s3223_s3] sm:$0xff] (!%p269_p2)  ;;  %v802_v9 = vld [vmem:[%s3223_s3 + $0x8] sm:$0xff] (!%p269_p2)  ;;  %v2353_v11 = vpack.c.bf16 (!%p269_p2), %v373_v7, %v372_v6  ;;  %v374_v12 = vld [vmem:[%s3221_s1 + $0x30] sm:$0xff] (!%p269_p2) }
   0x8   : > { %2346 = vmatprep.subr.bf16.mxu0 (!%p269_p2), %v2345_v3  ;;  %v2361_v10 = vpack.c.bf16 (!%p269_p2), %v802_v9, %v801_v8  ;;  %v375_v13 = vld [vmem:[%s3221_s1 + $0x38] sm:$0xff] (!%p269_p2)  ;;  %v803_v47 = vld [vmem:[%s3223_s3 + $0x10] sm:$0xff] (!%p269_p2)  ;;  %v1159_v50 = vld [vmem:[%s3224_s4] sm:$0xff] (!%p269_p2) }
   0x9   : > { %2348 = vmatpush3.bf16.msra.mxu0 (!%p269_p2), %v2345_v3  ;;  %v2357_v15 = vpack.c.bf16 (!%p269_p2), %v375_v13, %v374_v12  ;;  %v804_v48 = vld [vmem:[%s3223_s3 + $0x18] sm:$0xff] (!%p269_p2)  ;;  %v1160_v51 = vld [vmem:[%s3224_s4 + $0x8] sm:$0xff] (!%p269_p2)  ;;  %v1420_v53 = vld [vmem:[%s3225_s5] sm:$0xff] (!%p269_p2) }
   0xa   : > { %2350 = vmatprep.subr.bf16.mxu0 (!%p269_p2), %v2349_v5  ;;  %2362 = vmatprep.subr.bf16.mxu1 (!%p269_p2), %v2361_v10  ;;  %v2365_v49 = vpack.c.bf16 (!%p269_p2), %v804_v48, %v803_v47  ;;  %v2682_v52 = vpack.c.bf16 (!%p269_p2), %v1160_v51, %v1159_v50  ;;  %v1421_v54 = vld [vmem:[%s3225_s5 + $0x8] sm:$0xff] (!%p269_p2)  ;;  %v1422_v56 = vld [vmem:[%s3225_s5 + $0x10] sm:$0xff] (!%p269_p2)  ;;  %v1423_v57 = vld [vmem:[%s3225_s5 + $0x18] sm:$0xff] (!%p269_p2) }
   0xb   : > { %2364 = vmatpush3.bf16.msra.mxu1 (!%p269_p2), %v2361_v10  ;;  %v2691_v55 = vpack.c.bf16 (!%p269_p2), %v1421_v54, %v1420_v53  ;;  %v2701_v58 = vpack.c.bf16 (!%p269_p2), %v1423_v57, %v1422_v56  ;;  %v1424_v59 = vld [vmem:[%s3225_s5 + $0x20] sm:$0xff] (!%p269_p2)  ;;  %v1425_v60 = vld [vmem:[%s3225_s5 + $0x28] sm:$0xff] (!%p269_p2)  ;;  %v1426_v62 = vld [vmem:[%s3225_s5 + $0x30] sm:$0xff] (!%p269_p2) }
   0xc   : > { %2366 = vmatprep.subr.bf16.mxu1 (!%p269_p2), %v2365_v49  ;;  %v2711_v61 = vpack.c.bf16 (!%p269_p2), %v1425_v60, %v1424_v59  ;;  %v1427_v63 = vld [vmem:[%s3225_s5 + $0x38] sm:$0xff] (!%p269_p2)  ;;  %v2784_v1 = vld [vmem:[%s3222_s2] ss:$0 sm:$0xff] (!%p269_p2)  ;;  %v1161_v7 = vld [vmem:[%s3224_s4 + $0x10] sm:$0xff] (!%p269_p2) }
   0xd   : > { %s3230_s13 = smov (!%p313_p3, %s1814_s13), 63  ;;  %2352 = vmatpush3.bf16.msra.mxu0 %v2349_v5  ;;  %v2721_v0 = vpack.c.bf16 %v1427_v63, %v1426_v62  ;;  %v1162_v8 = vld [vmem:[%s3224_s4 + $0x18] sm:$0xff] }
   0xe   : > { %s2494_s24 = sshll.u32 %s3230_s13, 3  ;;  %2354 = vmatprep.subr.bf16.mxu0 %v2353_v11 }
   0xf   : > { %s2506_s10 = scalar_lea.vmem %s3220_s0, %s2494_s24  ;;  %2368 = vmatpush3.bf16.msra.mxu1 %v2365_v49  ;;  %s3011_s23 = scalar_lea.vmem %s3228_s8, %s2494_s24 }
  0x10   : > { %v2509_v14 = vld [vmem:[%s2506_s10] sm:$0xff]  ;;  %v2514_v16 = vld [vmem:[%s2506_s10 + $0x8] sm:$0xff]  ;;  %v2517_v17 = vld [vmem:[%s2506_s10 + $0x10] sm:$0xff]  ;;  %2370 = vmatprep.subr.bf16.mxu1 %v2682_v52  ;;  %s3073_s28 = scalar_lea.vmem %s3226_s6, %s2494_s24  ;;  %s3147_s9 = scalar_lea.vmem %s3227_s7, %s2494_s24 }
  0x11   : > { %2121 = vmatprep.mubr.msk.f32.mxu0 %vm383_vm0, %v2509_v14  ;;  %2356 = vmatpush3.bf16.msra.mxu0 %v2353_v11  ;;  %v2524_v18 = vld [vmem:[%s2506_s10 + $0x18] sm:$0xff]  ;;  %v2527_v19 = vld [vmem:[%s2506_s10 + $0x20] sm:$0xff]  ;;  %v2534_v20 = vld [vmem:[%s2506_s10 + $0x28] sm:$0xff] }
  0x12   : > { %2358 = vmatprep.subr.bf16.mxu0 %v2357_v15  ;;  %v2537_v21 = vld [vmem:[%s2506_s10 + $0x30] sm:$0xff]  ;;  %v2544_v22 = vld [vmem:[%s2506_s10 + $0x38] sm:$0xff]  ;;  %v2547_v23 = vld [vmem:[%s2506_s10 + $0x40] sm:$0xff] }
  0x13   : > { %v2554_v24 = vld [vmem:[%s2506_s10 + $0x48] sm:$0xff]  ;;  %v2557_v25 = vld [vmem:[%s2506_s10 + $0x50] sm:$0xff]  ;;  %v2564_v26 = vld [vmem:[%s2506_s10 + $0x58] sm:$0xff] }
  0x14   : > { %v2567_v27 = vld [vmem:[%s2506_s10 + $0x60] sm:$0xff]  ;;  %v2574_v28 = vld [vmem:[%s2506_s10 + $0x68] sm:$0xff]  ;;  %v2577_v29 = vld [vmem:[%s2506_s10 + $0x70] sm:$0xff] }
  0x15   : > { %2360 = vmatpush3.bf16.msra.mxu0 %v2357_v15  ;;  %v2584_v30 = vld [vmem:[%s2506_s10 + $0x78] sm:$0xff]  ;;  %v2587_v31 = vld [vmem:[%s2506_s10 + $0x80] sm:$0xff]  ;;  %v2594_v32 = vld [vmem:[%s2506_s10 + $0x88] sm:$0xff]  ;;  %v2373_v15 = vpack.c.bf16 %v1162_v8, %v1161_v7 }
  0x16   : > { %v2597_v33 = vld [vmem:[%s2506_s10 + $0x90] sm:$0xff]  ;;  %v2604_v34 = vld [vmem:[%s2506_s10 + $0x98] sm:$0xff]  ;;  %v2607_v35 = vld [vmem:[%s2506_s10 + $0xa0] sm:$0xff]  ;;  %2378 = vmatprep.subr.bf16.mxu0 %v2691_v55 }
  0x17   : > { %v2614_v36 = vld [vmem:[%s2506_s10 + $0xa8] sm:$0xff]  ;;  %v2617_v37 = vld [vmem:[%s2506_s10 + $0xb0] sm:$0xff]  ;;  %v2624_v38 = vld [vmem:[%s2506_s10 + $0xb8] sm:$0xff] }
  0x18   : > { %2122 = vmatmul.mubr.msk.f32.vlgmr.msra.gmra.mrb[0].mxu0 %vm383_vm0, %v2514_v16  ;;  %v2627_v39 = vld [vmem:[%s2506_s10 + $0xc0] sm:$0xff]  ;;  %v2634_v40 = vld [vmem:[%s2506_s10 + $0xc8] sm:$0xff]  ;;  %v2637_v41 = vld [vmem:[%s2506_s10 + $0xd0] sm:$0xff] }
  0x19   : > { %2124 = vmatprep.mubr.msk.f32.mxu0 %vm383_vm0, %v2517_v17  ;;  %v2644_v42 = vld [vmem:[%s2506_s10 + $0xd8] sm:$0xff]  ;;  %v2647_v43 = vld [vmem:[%s2506_s10 + $0xe0] sm:$0xff]  ;;  %v2654_v44 = vld [vmem:[%s2506_s10 + $0xe8] sm:$0xff]  ;;  %2380 = vmatpush3.bf16.msra.mxu0 %v2691_v55 }
  0x1a   : > { %v2657_v45 = vld [vmem:[%s2506_s10 + $0xf0] sm:$0xff]  ;;  %v2664_v46 = vld [vmem:[%s2506_s10 + $0xf8] sm:$0xff]  ;;  %2382 = vmatprep.subr.bf16.mxu0 %v2701_v58 }
  0x1c   : > { %2125 = vmatmul.mubr.msk.f32.gmra.mrb[2].mxu0 %vm383_vm0, %v2524_v18 }
  0x1d   : > { %2127 = vmatprep.mubr.msk.f32.mxu0 %vm383_vm0, %v2527_v19  ;;  %2384 = vmatpush3.bf16.msra.mxu0 %v2701_v58 }
  0x1e   : > { %2386 = vmatprep.subr.bf16.mxu0 %v2711_v61 }
  0x20   : > { %2128 = vmatmul.mubr.msk.f32.gmra.mrb[4].mxu0 %vm383_vm0, %v2534_v20 }
  0x21   : > { %2130 = vmatprep.mubr.msk.f32.mxu0 %vm383_vm0, %v2537_v21  ;;  %2388 = vmatpush3.bf16.msra.mxu0 %v2711_v61 }
  0x22   : > { %2390 = vmatprep.subr.bf16.mxu0 %v2721_v0 }
  0x24   : > { %2131 = vmatmul.mubr.msk.f32.gmra.mrb[6].mxu0 %vm383_vm0, %v2544_v22 }
  0x25   : > { %2133 = vmatprep.mubr.msk.f32.mxu0 %vm383_vm0, %v2547_v23  ;;  %2392 = vmatpush3.bf16.msra.mxu0 %v2721_v0 }
  0x28   : > { %2134 = vmatmul.mubr.msk.f32.gmra.mrb[8].mxu0 %vm383_vm0, %v2554_v24 }
  0x29   : > { %2136 = vmatprep.mubr.msk.f32.mxu0 %vm383_vm0, %v2557_v25 }
  0x2c   : > { %2137 = vmatmul.mubr.msk.f32.gmra.mrb[10].mxu0 %vm383_vm0, %v2564_v26 }
  0x2d   : > { %2139 = vmatprep.mubr.msk.f32.mxu0 %vm383_vm0, %v2567_v27 }
  0x30   : > { %2140 = vmatmul.mubr.msk.f32.gmra.mrb[12].mxu0 %vm383_vm0, %v2574_v28 }
  0x31   : > { %2142 = vmatprep.mubr.msk.f32.mxu0 %vm383_vm0, %v2577_v29 }
  0x34   : > { %2143 = vmatmul.mubr.msk.f32.gmra.mrb[14].mxu0 %vm383_vm0, %v2584_v30 }
  0x35   : > { %2145 = vmatprep.mubr.msk.f32.mxu0 %vm383_vm0, %v2587_v31 }
  0x38   : > { %2146 = vmatmul.mubr.msk.f32.gmra.mrb[16].mxu0 %vm383_vm0, %v2594_v32 }
  0x39   : > { %2148 = vmatprep.mubr.msk.f32.mxu0 %vm383_vm0, %v2597_v33 }
  0x3c   : > { %2149 = vmatmul.mubr.msk.f32.gmra.mrb[18].mxu0 %vm383_vm0, %v2604_v34 }
  0x3d   : > { %2151 = vmatprep.mubr.msk.f32.mxu0 %vm383_vm0, %v2607_v35 }
  0x40   : > { %2152 = vmatmul.mubr.msk.f32.gmra.mrb[20].mxu0 %vm383_vm0, %v2614_v36 }
  0x41   : > { %2154 = vmatprep.mubr.msk.f32.mxu0 %vm383_vm0, %v2617_v37 }
  0x44   : > { %2155 = vmatmul.mubr.msk.f32.gmra.mrb[22].mxu0 %vm383_vm0, %v2624_v38 }
  0x45   : > { %2157 = vmatprep.mubr.msk.f32.mxu0 %vm383_vm0, %v2627_v39 }
  0x48   : > { %2158 = vmatmul.mubr.msk.f32.gmra.mrb[24].mxu0 %vm383_vm0, %v2634_v40 }
  0x49   : > { %2160 = vmatprep.mubr.msk.f32.mxu0 %vm383_vm0, %v2637_v41 }
  0x4c   : > { %2161 = vmatmul.mubr.msk.f32.gmra.mrb[26].mxu0 %vm383_vm0, %v2644_v42 }
  0x4d   : > { %2163 = vmatprep.mubr.msk.f32.mxu0 %vm383_vm0, %v2647_v43 }
  0x50   : > { %2164 = vmatmul.mubr.msk.f32.gmra.mrb[28].mxu0 %vm383_vm0, %v2654_v44 }
  0x51   : > { %2166 = vmatprep.mubr.msk.f32.mxu0 %vm383_vm0, %v2657_v45 }
  0x54   : > { %2167 = vmatmul.mubr.msk.f32.gmra.mrb[30].mxu0 %vm383_vm0, %v2664_v46 }
  0x55   : > { %2297 = vmatprep.mubr.msk.f32.mxu0 %vm383_vm0, %v2509_v14 }
  0x58   : > { %2298 = vmatmul.mubr.msk.f32.vlgmr.msra.gmra.mrb[32].mxu0 %vm383_vm0, %v2514_v16 }
  0x59   : > { %2300 = vmatprep.mubr.msk.f32.mxu0 %vm383_vm0, %v2517_v17 }
  0x5c   : > { %2301 = vmatmul.mubr.msk.f32.gmra.mrb[34].mxu0 %vm383_vm0, %v2524_v18 }
  0x5d   : > { %2303 = vmatprep.mubr.msk.f32.mxu0 %vm383_vm0, %v2527_v19 }
  0x60   : > { %2304 = vmatmul.mubr.msk.f32.gmra.mrb[36].mxu0 %vm383_vm0, %v2534_v20 }
  0x61   : > { %2306 = vmatprep.mubr.msk.f32.mxu0 %vm383_vm0, %v2537_v21 }
  0x64   : > { %2307 = vmatmul.mubr.msk.f32.gmra.mrb[38].mxu0 %vm383_vm0, %v2544_v22 }
  0x65   : > { %2309 = vmatprep.mubr.msk.f32.mxu0 %vm383_vm0, %v2547_v23 }
  0x68   : > { %2310 = vmatmul.mubr.msk.f32.gmra.mrb[40].mxu0 %vm383_vm0, %v2554_v24 }
  0x69   : > { %2312 = vmatprep.mubr.msk.f32.mxu0 %vm383_vm0, %v2557_v25 }
  0x6c   : > { %2313 = vmatmul.mubr.msk.f32.gmra.mrb[42].mxu0 %vm383_vm0, %v2564_v26 }
  0x6d   : > { %2315 = vmatprep.mubr.msk.f32.mxu0 %vm383_vm0, %v2567_v27 }
  0x70   : > { %2316 = vmatmul.mubr.msk.f32.gmra.mrb[44].mxu0 %vm383_vm0, %v2574_v28 }
  0x71   : > { %2318 = vmatprep.mubr.msk.f32.mxu0 %vm383_vm0, %v2577_v29 }
  0x74   : > { %2319 = vmatmul.mubr.msk.f32.gmra.mrb[46].mxu0 %vm383_vm0, %v2584_v30 }
  0x75   : > { %2321 = vmatprep.mubr.msk.f32.mxu0 %vm383_vm0, %v2587_v31 }
  0x78   : > { %2322 = vmatmul.mubr.msk.f32.gmra.mrb[48].mxu0 %vm383_vm0, %v2594_v32 }
  0x79   : > { %2324 = vmatprep.mubr.msk.f32.mxu0 %vm383_vm0, %v2597_v33 }
  0x7c   : > { %2325 = vmatmul.mubr.msk.f32.gmra.mrb[50].mxu0 %vm383_vm0, %v2604_v34 }
  0x7d   : > { %2327 = vmatprep.mubr.msk.f32.mxu0 %vm383_vm0, %v2607_v35 }
  0x80   : > { %2328 = vmatmul.mubr.msk.f32.gmra.mrb[52].mxu0 %vm383_vm0, %v2614_v36 }
  0x81   : > { %2330 = vmatprep.mubr.msk.f32.mxu0 %vm383_vm0, %v2617_v37 }
  0x84   : > { %2331 = vmatmul.mubr.msk.f32.gmra.mrb[54].mxu0 %vm383_vm0, %v2624_v38 }
  0x85   : > { %2333 = vmatprep.mubr.msk.f32.mxu0 %vm383_vm0, %v2627_v39 }
  0x88   : > { %2334 = vmatmul.mubr.msk.f32.gmra.mrb[56].mxu0 %vm383_vm0, %v2634_v40 }
  0x89   : > { %2336 = vmatprep.mubr.msk.f32.mxu0 %vm383_vm0, %v2637_v41 }
  0x8c   : > { %2337 = vmatmul.mubr.msk.f32.gmra.mrb[58].mxu0 %vm383_vm0, %v2644_v42 }
  0x8d   : > { %2339 = vmatprep.mubr.msk.f32.mxu0 %vm383_vm0, %v2647_v43 }
  0x90   : > { %2340 = vmatmul.mubr.msk.f32.gmra.mrb[60].mxu0 %vm383_vm0, %v2654_v44 }
  0xeb   : > { %v2123_v2 = vpop.f32.mrb[0].mxu0 }
  0xec   : > { %v552_v3 = vadd.f32 %v2123_v2, %v2784_v1  ;;  %v546_v4 = vpop.f32.mrb[1].mxu0 }
  0xed   : > { %v547_v5 = vadd.f32 %v2784_v1, %v546_v4 }
  0xee   : > { %v738_v6 = vmul.f32 0.2, %v552_v3  ;;  %vm706_vm1 = vcmp.ge.f32.partialorder %v552_v3, 0.0 }
  0xef   : > { %v2126_v9 = vpop.f32.mrb[2].mxu0  ;;  %vm705_vm2 = vcmp.ge.f32.partialorder %v547_v5, 0.0  ;;  %v737_v10 = vmul.f32 0.2, %v547_v5 }
  0xf0   : > { %v562_v11 = vadd.f32 %v2126_v9, %v2784_v1  ;;  %v556_v12 = vpop.f32.mrb[3].mxu0  ;;  %v2802_v17 = vsel %vm706_vm1, %v552_v3, %v738_v6 }
  0xf1   : > { %v557_v13 = vadd.f32 %v2784_v1, %v556_v12  ;;  %v2798_v14 = vsel %vm705_vm2, %v547_v5, %v737_v10 }
  0xf2   : > { %v740_v16 = vmul.f32 0.2, %v562_v11  ;;  %2177 = vmatprep.mubr.msk.f32.mxu1 %vm805_vm3, %v2798_v14  ;;  %vm708_vm4 = vcmp.ge.f32.partialorder %v562_v11, 0.0 }
  0xf3   : > { %vm707_vm5 = vcmp.ge.f32.partialorder %v557_v13, 0.0  ;;  %v739_v18 = vmul.f32 0.2, %v557_v13  ;;  %v2129_v19 = vpop.f32.mrb[4].mxu0  ;;  %2178 = vmatmul.mubr.msk.f32.vlgmr.msra.gmra.mrb[0].mxu1 %vm805_vm3, %v2802_v17 }
  0xf4   : > { %v572_v20 = vadd.f32 %v2129_v19, %v2784_v1  ;;  %2372 = vmatpush3.bf16.msra.mxu1 %v2682_v52  ;;  %v566_v21 = vpop.f32.mrb[5].mxu0  ;;  %v2813_v25 = vsel %vm708_vm4, %v562_v11, %v740_v16 }
  0xf5   : > { %v567_v22 = vadd.f32 %v2784_v1, %v566_v21  ;;  %v2809_v23 = vsel %vm707_vm5, %v557_v13, %v739_v18  ;;  %2374 = vmatprep.subr.bf16.mxu1 %v2373_v15 }
  0xf6   : > { %v742_v24 = vmul.f32 0.2, %v572_v20  ;;  %2180 = vmatprep.mubr.msk.f32.mxu1 %vm805_vm3, %v2809_v23  ;;  %vm710_vm6 = vcmp.ge.f32.partialorder %v572_v20, 0.0 }
  0xf7   : > { %vm709_vm7 = vcmp.ge.f32.partialorder %v567_v22, 0.0  ;;  %v741_v26 = vmul.f32 0.2, %v567_v22  ;;  %v2132_v27 = vpop.f32.mrb[6].mxu0  ;;  %2181 = vmatmul.mubr.msk.f32.gmra.mrb[2].mxu1 %vm805_vm3, %v2813_v25 }
  0xf8   : > { %v582_v28 = vadd.f32 %v2132_v27, %v2784_v1  ;;  %v576_v29 = vpop.f32.mrb[7].mxu0  ;;  %2376 = vmatpush3.bf16.msra.mxu1 %v2373_v15  ;;  %v2824_v33 = vsel %vm710_vm6, %v572_v20, %v742_v24 }
  0xf9   : > { %v577_v30 = vadd.f32 %v2784_v1, %v576_v29  ;;  %v2819_v31 = vsel %vm709_vm7, %v567_v22, %v741_v26  ;;  %2393 = vmatprep.subr.bf16.mxu1 %v2691_v55 }
  0xfa   : > { %v744_v32 = vmul.f32 0.2, %v582_v28  ;;  %2183 = vmatprep.mubr.msk.f32.mxu1 %vm805_vm3, %v2819_v31  ;;  %vm712_vm8 = vcmp.ge.f32.partialorder %v582_v28, 0.0 }
  0xfb   : > { %vm711_vm9 = vcmp.ge.f32.partialorder %v577_v30, 0.0  ;;  %v743_v34 = vmul.f32 0.2, %v577_v30  ;;  %v2135_v35 = vpop.f32.mrb[8].mxu0  ;;  %2184 = vmatmul.mubr.msk.f32.gmra.mrb[4].mxu1 %vm805_vm3, %v2824_v33 }
  0xfc   : > { %v592_v36 = vadd.f32 %v2135_v35, %v2784_v1  ;;  %v586_v37 = vpop.f32.mrb[9].mxu0  ;;  %v2834_v41 = vsel %vm712_vm8, %v582_v28, %v744_v32 }
  0xfd   : > { %v587_v38 = vadd.f32 %v2784_v1, %v586_v37  ;;  %v2830_v39 = vsel %vm711_vm9, %v577_v30, %v743_v34 }
  0xfe   : > { %v746_v40 = vmul.f32 0.2, %v592_v36  ;;  %2186 = vmatprep.mubr.msk.f32.mxu1 %vm805_vm3, %v2830_v39  ;;  %vm714_vm10 = vcmp.ge.f32.partialorder %v592_v36, 0.0 }
  0xff   : > { %vm713_vm11 = vcmp.ge.f32.partialorder %v587_v38, 0.0  ;;  %v745_v42 = vmul.f32 0.2, %v587_v38  ;;  %v2138_v43 = vpop.f32.mrb[10].mxu0  ;;  %2187 = vmatmul.mubr.msk.f32.gmra.mrb[6].mxu1 %vm805_vm3, %v2834_v41 }
 0x100   : > { %v602_v44 = vadd.f32 %v2138_v43, %v2784_v1  ;;  %v596_v47 = vpop.f32.mrb[11].mxu0  ;;  %v2844_v51 = vsel %vm714_vm10, %v592_v36, %v746_v40 }
 0x101   : > { %v597_v48 = vadd.f32 %v2784_v1, %v596_v47  ;;  %v2840_v49 = vsel %vm713_vm11, %v587_v38, %v745_v42 }
 0x102   : > { %v748_v50 = vmul.f32 0.2, %v602_v44  ;;  %2189 = vmatprep.mubr.msk.f32.mxu1 %vm805_vm3, %v2840_v49  ;;  %vm716_vm12 = vcmp.ge.f32.partialorder %v602_v44, 0.0 }
 0x103   : > { %vm715_vm13 = vcmp.ge.f32.partialorder %v597_v48, 0.0  ;;  %v747_v52 = vmul.f32 0.2, %v597_v48  ;;  %v2141_v53 = vpop.f32.mrb[12].mxu0  ;;  %2190 = vmatmul.mubr.msk.f32.gmra.mrb[8].mxu1 %vm805_vm3, %v2844_v51 }
 0x104   : > { %v612_v54 = vadd.f32 %v2141_v53, %v2784_v1  ;;  %v606_v56 = vpop.f32.mrb[13].mxu0  ;;  %v2854_v62 = vsel %vm716_vm12, %v602_v44, %v748_v50 }
 0x105   : > { %v607_v57 = vadd.f32 %v2784_v1, %v606_v56  ;;  %v2850_v59 = vsel %vm715_vm13, %v597_v48, %v747_v52 }
 0x106   : > { %v750_v60 = vmul.f32 0.2, %v612_v54  ;;  %2192 = vmatprep.mubr.msk.f32.mxu1 %vm805_vm3, %v2850_v59  ;;  %vm718_vm14 = vcmp.ge.f32.partialorder %v612_v54, 0.0 }
 0x107   : > { %vm717_vm15 = vcmp.ge.f32.partialorder %v607_v57, 0.0  ;;  %v749_v63 = vmul.f32 0.2, %v607_v57  ;;  %v2144_v2 = vpop.f32.mrb[14].mxu0  ;;  %2193 = vmatmul.mubr.msk.f32.gmra.mrb[10].mxu1 %vm805_vm3, %v2854_v62 }
 0x108   : > { %v622_v3 = vadd.f32 %v2144_v2, %v2784_v1  ;;  %v616_v4 = vpop.f32.mrb[15].mxu0  ;;  %v2864_v8 = vsel %vm718_vm14, %v612_v54, %v750_v60 }
 0x109   : > { %v617_v5 = vadd.f32 %v2784_v1, %v616_v4  ;;  %v2860_v6 = vsel %vm717_vm15, %v607_v57, %v749_v63 }
 0x10a   : > { %v752_v7 = vmul.f32 0.2, %v622_v3  ;;  %2195 = vmatprep.mubr.msk.f32.mxu1 %vm805_vm3, %v2860_v6  ;;  %vm720_vm1 = vcmp.ge.f32.partialorder %v622_v3, 0.0 }
 0x10b   : > { %vm719_vm2 = vcmp.ge.f32.partialorder %v617_v5, 0.0  ;;  %v751_v9 = vmul.f32 0.2, %v617_v5  ;;  %v2147_v10 = vpop.f32.mrb[16].mxu0  ;;  %2196 = vmatmul.mubr.msk.f32.gmra.mrb[12].mxu1 %vm805_vm3, %v2864_v8 }
 0x10c   : > { %v632_v11 = vadd.f32 %v2147_v10, %v2784_v1  ;;  %v626_v12 = vpop.f32.mrb[17].mxu0  ;;  %v2874_v18 = vsel %vm720_vm1, %v622_v3, %v752_v7 }
 0x10d   : > { %v627_v13 = vadd.f32 %v2784_v1, %v626_v12  ;;  %v2870_v15 = vsel %vm719_vm2, %v617_v5, %v751_v9 }
 0x10e   : > { %v754_v16 = vmul.f32 0.2, %v632_v11  ;;  %2198 = vmatprep.mubr.msk.f32.mxu1 %vm805_vm3, %v2870_v15  ;;  %vm722_vm4 = vcmp.ge.f32.partialorder %v632_v11, 0.0 }
 0x10f   : > { %vm721_vm5 = vcmp.ge.f32.partialorder %v627_v13, 0.0  ;;  %v753_v19 = vmul.f32 0.2, %v627_v13  ;;  %v2150_v20 = vpop.f32.mrb[18].mxu0  ;;  %2199 = vmatmul.mubr.msk.f32.gmra.mrb[14].mxu1 %vm805_vm3, %v2874_v18 }
 0x110   : > { %v642_v21 = vadd.f32 %v2150_v20, %v2784_v1  ;;  %v636_v22 = vpop.f32.mrb[19].mxu0  ;;  %v2884_v28 = vsel %vm722_vm4, %v632_v11, %v754_v16 }
 0x111   : > { %v637_v24 = vadd.f32 %v2784_v1, %v636_v22  ;;  %v2880_v26 = vsel %vm721_vm5, %v627_v13, %v753_v19 }
 0x112   : > { %v756_v27 = vmul.f32 0.2, %v642_v21  ;;  %2201 = vmatprep.mubr.msk.f32.mxu1 %vm805_vm3, %v2880_v26  ;;  %vm724_vm6 = vcmp.ge.f32.partialorder %v642_v21, 0.0 }
 0x113   : > { %vm723_vm7 = vcmp.ge.f32.partialorder %v637_v24, 0.0  ;;  %v755_v29 = vmul.f32 0.2, %v637_v24  ;;  %v2153_v30 = vpop.f32.mrb[20].mxu0  ;;  %2202 = vmatmul.mubr.msk.f32.gmra.mrb[16].mxu1 %vm805_vm3, %v2884_v28 }
 0x114   : > { %v652_v32 = vadd.f32 %v2153_v30, %v2784_v1  ;;  %v646_v34 = vpop.f32.mrb[21].mxu0  ;;  %v2894_v38 = vsel %vm724_vm6, %v642_v21, %v756_v27 }
 0x115   : > { %v647_v35 = vadd.f32 %v2784_v1, %v646_v34  ;;  %v2890_v36 = vsel %vm723_vm7, %v637_v24, %v755_v29 }
 0x116   : > { %v758_v37 = vmul.f32 0.2, %v652_v32  ;;  %2204 = vmatprep.mubr.msk.f32.mxu1 %vm805_vm3, %v2890_v36  ;;  %vm726_vm8 = vcmp.ge.f32.partialorder %v652_v32, 0.0 }
 0x117   : > { %vm725_vm9 = vcmp.ge.f32.partialorder %v647_v35, 0.0  ;;  %v757_v40 = vmul.f32 0.2, %v647_v35  ;;  %v2156_v42 = vpop.f32.mrb[22].mxu0  ;;  %2205 = vmatmul.mubr.msk.f32.gmra.mrb[18].mxu1 %vm805_vm3, %v2894_v38 }
 0x118   : > { %v662_v43 = vadd.f32 %v2156_v42, %v2784_v1  ;;  %v656_v44 = vpop.f32.mrb[23].mxu0  ;;  %v2904_v52 = vsel %vm726_vm8, %v652_v32, %v758_v37 }
 0x119   : > { %v657_v47 = vadd.f32 %v2784_v1, %v656_v44  ;;  %v2900_v48 = vsel %vm725_vm9, %v647_v35, %v757_v40 }
 0x11a   : > { %v760_v50 = vmul.f32 0.2, %v662_v43  ;;  %2207 = vmatprep.mubr.msk.f32.mxu1 %vm805_vm3, %v2900_v48  ;;  %vm728_vm10 = vcmp.ge.f32.partialorder %v662_v43, 0.0 }
 0x11b   : > { %vm727_vm11 = vcmp.ge.f32.partialorder %v657_v47, 0.0  ;;  %v759_v53 = vmul.f32 0.2, %v657_v47  ;;  %v2159_v54 = vpop.f32.mrb[24].mxu0  ;;  %2208 = vmatmul.mubr.msk.f32.gmra.mrb[20].mxu1 %vm805_vm3, %v2904_v52 }
 0x11c   : > { %v672_v56 = vadd.f32 %v2159_v54, %v2784_v1  ;;  %v666_v57 = vpop.f32.mrb[25].mxu0  ;;  %v2914_v3 = vsel %vm728_vm10, %v662_v43, %v760_v50 }
 0x11d   : > { %v667_v60 = vadd.f32 %v2784_v1, %v666_v57  ;;  %v2910_v63 = vsel %vm727_vm11, %v657_v47, %v759_v53 }
 0x11e   : > { %v762_v2 = vmul.f32 0.2, %v672_v56  ;;  %2210 = vmatprep.mubr.msk.f32.mxu1 %vm805_vm3, %v2910_v63  ;;  %vm730_vm12 = vcmp.ge.f32.partialorder %v672_v56, 0.0 }
 0x11f   : > { %vm729_vm13 = vcmp.ge.f32.partialorder %v667_v60, 0.0  ;;  %v761_v4 = vmul.f32 0.2, %v667_v60  ;;  %v2162_v5 = vpop.f32.mrb[26].mxu0  ;;  %2211 = vmatmul.mubr.msk.f32.gmra.mrb[22].mxu1 %vm805_vm3, %v2914_v3 }
 0x120   : > { %v682_v7 = vadd.f32 %v2162_v5, %v2784_v1  ;;  %v676_v9 = vpop.f32.mrb[27].mxu0  ;;  %v2924_v13 = vsel %vm730_vm12, %v672_v56, %v762_v2 }
 0x121   : > { %v677_v10 = vadd.f32 %v2784_v1, %v676_v9  ;;  %v2920_v11 = vsel %vm729_vm13, %v667_v60, %v761_v4 }
 0x122   : > { %v764_v12 = vmul.f32 0.2, %v682_v7  ;;  %2213 = vmatprep.mubr.msk.f32.mxu1 %vm805_vm3, %v2920_v11  ;;  %vm732_vm14 = vcmp.ge.f32.partialorder %v682_v7, 0.0 }
 0x123   : > { %vm731_vm15 = vcmp.ge.f32.partialorder %v677_v10, 0.0  ;;  %v763_v16 = vmul.f32 0.2, %v677_v10  ;;  %v2165_v19 = vpop.f32.mrb[28].mxu0  ;;  %2214 = vmatmul.mubr.msk.f32.gmra.mrb[24].mxu1 %vm805_vm3, %v2924_v13 }
 0x124   : > { %v692_v20 = vadd.f32 %v2165_v19, %v2784_v1  ;;  %v686_v21 = vpop.f32.mrb[29].mxu0  ;;  %v796_v29 = vsel %vm732_vm14, %v682_v7, %v764_v12 }
 0x125   : > { %v687_v22 = vadd.f32 %v2784_v1, %v686_v21  ;;  %v795_v24 = vsel %vm731_vm15, %v677_v10, %v763_v16 }
 0x126   : > { %v766_v27 = vmul.f32 0.2, %v692_v20  ;;  %2216 = vmatprep.mubr.msk.f32.mxu1 %vm805_vm3, %v795_v24  ;;  %vm734_vm1 = vcmp.ge.f32.partialorder %v692_v20, 0.0 }
 0x127   : > { %vm733_vm2 = vcmp.ge.f32.partialorder %v687_v22, 0.0  ;;  %v765_v30 = vmul.f32 0.2, %v687_v22  ;;  %v2168_v32 = vpop.f32.mrb[30].mxu0  ;;  %2217 = vmatmul.mubr.msk.f32.gmra.mrb[26].mxu1 %vm805_vm3, %v796_v29 }
 0x128   : > { %v702_v34 = vadd.f32 %v2168_v32, %v2784_v1  ;;  %v696_v35 = vpop.f32.mrb[31].mxu0  ;;  %v798_v43 = vsel %vm734_vm1, %v692_v20, %v766_v27 }
 0x129   : > { %v697_v37 = vadd.f32 %v2784_v1, %v696_v35  ;;  %v797_v40 = vsel %vm733_vm2, %v687_v22, %v765_v30 }
 0x12a   : > { %v768_v42 = vmul.f32 0.2, %v702_v34  ;;  %2219 = vmatprep.mubr.msk.f32.mxu1 %vm805_vm3, %v797_v40  ;;  %vm736_vm4 = vcmp.ge.f32.partialorder %v702_v34, 0.0 }
 0x12b   : > { %vm735_vm5 = vcmp.ge.f32.partialorder %v697_v37, 0.0  ;;  %v767_v44 = vmul.f32 0.2, %v697_v37  ;;  %2220 = vmatmul.mubr.msk.f32.gmra.mrb[28].mxu1 %vm805_vm3, %v798_v43 }
 0x12c   : > { %v800_v50 = vsel %vm736_vm4, %v702_v34, %v768_v42 }
 0x12d   : > { %v799_v47 = vsel %vm735_vm5, %v697_v37, %v767_v44 }
 0x12e   : > { %2222 = vmatprep.mubr.msk.f32.mxu1 %vm805_vm3, %v799_v47 }
 0x12f   : > { %2223 = vmatmul.mubr.msk.f32.gmra.mrb[30].mxu1 %vm805_vm3, %v800_v50 }
 0x130   : > { %2233 = vmatprep.mubr.msk.f32.mxu1 %vm805_vm3, %v2798_v14 }
 0x133   : > { %2234 = vmatmul.mubr.msk.f32.vlgmr.msra.gmra.mrb[32].mxu1 %vm805_vm3, %v2802_v17 }
 0x134   : > { %2397 = vmatpush3.bf16.msra.mxu1 %v2691_v55  ;;  %2236 = vmatprep.mubr.msk.f32.mxu1 %vm805_vm3, %v2809_v23  ;;  %v2299_v55 = vpop.f32.mrb[32].mxu0 }
 0x135   : > { %2394 = vmatprep.subr.bf16.mxu1 %v2701_v58  ;;  %1654 = vst.msk [vmem:[%s3011_s23 + $0x8] sm:$0xff] %vm805_vm3, %v2299_v55 }
 0x137   : > { %2237 = vmatmul.mubr.msk.f32.gmra.mrb[34].mxu1 %vm805_vm3, %v2813_v25 }
 0x138   : > { %2239 = vmatprep.mubr.msk.f32.mxu1 %vm805_vm3, %v2819_v31  ;;  %2398 = vmatpush3.bf16.msra.mxu1 %v2701_v58 }
 0x139   : > { %2395 = vmatprep.subr.bf16.mxu1 %v2711_v61 }
 0x13b   : > { %2240 = vmatmul.mubr.msk.f32.gmra.mrb[36].mxu1 %vm805_vm3, %v2824_v33 }
 0x13c   : > { %2242 = vmatprep.mubr.msk.f32.mxu1 %vm805_vm3, %v2830_v39  ;;  %2399 = vmatpush3.bf16.msra.mxu1 %v2711_v61 }
 0x13d   : > { %2396 = vmatprep.subr.bf16.mxu1 %v2721_v0 }
 0x13f   : > { %2243 = vmatmul.mubr.msk.f32.gmra.mrb[38].mxu1 %vm805_vm3, %v2834_v41 }
 0x140   : > { %2245 = vmatprep.mubr.msk.f32.mxu1 %vm805_vm3, %v2840_v49  ;;  %2400 = vmatpush3.bf16.msra.mxu1 %v2721_v0 }
 0x143   : > { %2246 = vmatmul.mubr.msk.f32.gmra.mrb[40].mxu1 %vm805_vm3, %v2844_v51 }
 0x144   : > { %2248 = vmatprep.mubr.msk.f32.mxu1 %vm805_vm3, %v2850_v59 }
 0x147   : > { %2249 = vmatmul.mubr.msk.f32.gmra.mrb[42].mxu1 %vm805_vm3, %v2854_v62 }
 0x148   : > { %2251 = vmatprep.mubr.msk.f32.mxu1 %vm805_vm3, %v2860_v6 }
 0x14b   : > { %2252 = vmatmul.mubr.msk.f32.gmra.mrb[44].mxu1 %vm805_vm3, %v2864_v8 }
 0x14c   : > { %2254 = vmatprep.mubr.msk.f32.mxu1 %vm805_vm3, %v2870_v15 }
 0x14f   : > { %2255 = vmatmul.mubr.msk.f32.gmra.mrb[46].mxu1 %vm805_vm3, %v2874_v18 }
 0x150   : > { %2257 = vmatprep.mubr.msk.f32.mxu1 %vm805_vm3, %v2880_v26 }
 0x153   : > { %2258 = vmatmul.mubr.msk.f32.gmra.mrb[48].mxu1 %vm805_vm3, %v2884_v28 }
 0x154   : > { %2260 = vmatprep.mubr.msk.f32.mxu1 %vm805_vm3, %v2890_v36 }
 0x157   : > { %2261 = vmatmul.mubr.msk.f32.gmra.mrb[50].mxu1 %vm805_vm3, %v2894_v38 }
 0x158   : > { %2263 = vmatprep.mubr.msk.f32.mxu1 %vm805_vm3, %v2900_v48 }
 0x15b   : > { %2264 = vmatmul.mubr.msk.f32.gmra.mrb[52].mxu1 %vm805_vm3, %v2904_v52 }
 0x15c   : > { %2266 = vmatprep.mubr.msk.f32.mxu1 %vm805_vm3, %v2910_v63 }
 0x15f   : > { %2267 = vmatmul.mubr.msk.f32.gmra.mrb[54].mxu1 %vm805_vm3, %v2914_v3 }
 0x160   : > { %2269 = vmatprep.mubr.msk.f32.mxu1 %vm805_vm3, %v2920_v11 }
 0x163   : > { %2270 = vmatmul.mubr.msk.f32.gmra.mrb[56].mxu1 %vm805_vm3, %v2924_v13 }
 0x164   : > { %2272 = vmatprep.mubr.msk.f32.mxu1 %vm805_vm3, %v795_v24 }
 0x167   : > { %2273 = vmatmul.mubr.msk.f32.gmra.mrb[58].mxu1 %vm805_vm3, %v796_v29 }
 0x168   : > { %2275 = vmatprep.mubr.msk.f32.mxu1 %vm805_vm3, %v797_v40 }
 0x16b   : > { %2276 = vmatmul.mubr.msk.f32.gmra.mrb[60].mxu1 %vm805_vm3, %v798_v43 }
 0x16c   : > { %2278 = vmatprep.mubr.msk.f32.mxu1 %vm805_vm3, %v799_v47 }
 0x16f   : > { %2279 = vmatmul.mubr.msk.f32.gmra.mrb[62].mxu1 %vm805_vm3, %v800_v50 }
 0x170   : > { %2342 = vmatprep.mubr.msk.f32.mxu1 %vm383_vm0, %v2657_v45  ;;  %v1494_v45 = vpop.f32.mrb[33].mxu0 }
 0x171   : > { %1653 = vst.msk [vmem:[%s3011_s23] sm:$0xff] %vm805_vm3, %v1494_v45 }
 0x173   : > { %2343 = vmatmul.mubr.msk.f32.vlgmr.msra.gmra.mrb[64].mxu1 %vm383_vm0, %v2664_v46  ;;  %v2302_v46 = vpop.f32.mrb[34].mxu0 }
 0x174   : > { %1656 = vst.msk [vmem:[%s3011_s23 + $0x18] sm:$0xff] %vm805_vm3, %v2302_v46  ;;  %v1504_v58 = vpop.f32.mrb[35].mxu0 }
 0x175   : > { %1655 = vst.msk [vmem:[%s3011_s23 + $0x10] sm:$0xff] %vm805_vm3, %v1504_v58  ;;  %v2305_v61 = vpop.f32.mrb[36].mxu0 }
 0x176   : > { %1658 = vst.msk [vmem:[%s3011_s23 + $0x28] sm:$0xff] %vm805_vm3, %v2305_v61  ;;  %v1514_v0 = vpop.f32.mrb[37].mxu0 }
 0x177   : > { %1657 = vst.msk [vmem:[%s3011_s23 + $0x20] sm:$0xff] %vm805_vm3, %v1514_v0  ;;  %v2308_v1 = vpop.f32.mrb[38].mxu0 }
 0x178   : > { %1660 = vst.msk [vmem:[%s3011_s23 + $0x38] sm:$0xff] %vm805_vm3, %v2308_v1  ;;  %v1524_v14 = vpop.f32.mrb[39].mxu0 }
 0x179   : > { %1659 = vst.msk [vmem:[%s3011_s23 + $0x30] sm:$0xff] %vm805_vm3, %v1524_v14  ;;  %v2311_v17 = vpop.f32.mrb[40].mxu0 }
 0x17a   : > { %1662 = vst.msk [vmem:[%s3011_s23 + $0x48] sm:$0xff] %vm805_vm3, %v2311_v17  ;;  %v1534_v23 = vpop.f32.mrb[41].mxu0 }
 0x17b   : > { %1661 = vst.msk [vmem:[%s3011_s23 + $0x40] sm:$0xff] %vm805_vm3, %v1534_v23  ;;  %v2314_v25 = vpop.f32.mrb[42].mxu0 }
 0x17c   : > { %1664 = vst.msk [vmem:[%s3011_s23 + $0x58] sm:$0xff] %vm805_vm3, %v2314_v25  ;;  %v1544_v31 = vpop.f32.mrb[43].mxu0 }
 0x17d   : > { %1663 = vst.msk [vmem:[%s3011_s23 + $0x50] sm:$0xff] %vm805_vm3, %v1544_v31  ;;  %v2317_v33 = vpop.f32.mrb[44].mxu0 }
 0x17e   : > { %1666 = vst.msk [vmem:[%s3011_s23 + $0x68] sm:$0xff] %vm805_vm3, %v2317_v33  ;;  %v1554_v39 = vpop.f32.mrb[45].mxu0 }
 0x17f   : > { %1665 = vst.msk [vmem:[%s3011_s23 + $0x60] sm:$0xff] %vm805_vm3, %v1554_v39  ;;  %v2320_v41 = vpop.f32.mrb[46].mxu0 }
 0x180   : > { %1668 = vst.msk [vmem:[%s3011_s23 + $0x78] sm:$0xff] %vm805_vm3, %v2320_v41  ;;  %v1564_v49 = vpop.f32.mrb[47].mxu0 }
 0x181   : > { %1667 = vst.msk [vmem:[%s3011_s23 + $0x70] sm:$0xff] %vm805_vm3, %v1564_v49  ;;  %v2323_v51 = vpop.f32.mrb[48].mxu0 }
 0x182   : > { %1670 = vst.msk [vmem:[%s3011_s23 + $0x88] sm:$0xff] %vm805_vm3, %v2323_v51  ;;  %v1574_v59 = vpop.f32.mrb[49].mxu0 }
 0x183   : > { %1669 = vst.msk [vmem:[%s3011_s23 + $0x80] sm:$0xff] %vm805_vm3, %v1574_v59  ;;  %v2326_v62 = vpop.f32.mrb[50].mxu0 }
 0x184   : > { %1672 = vst.msk [vmem:[%s3011_s23 + $0x98] sm:$0xff] %vm805_vm3, %v2326_v62  ;;  %v1584_v6 = vpop.f32.mrb[51].mxu0 }
 0x185   : > { %1671 = vst.msk [vmem:[%s3011_s23 + $0x90] sm:$0xff] %vm805_vm3, %v1584_v6  ;;  %v2329_v8 = vpop.f32.mrb[52].mxu0 }
 0x186   : > { %1674 = vst.msk [vmem:[%s3011_s23 + $0xa8] sm:$0xff] %vm805_vm3, %v2329_v8  ;;  %v1594_v15 = vpop.f32.mrb[53].mxu0 }
 0x187   : > { %1673 = vst.msk [vmem:[%s3011_s23 + $0xa0] sm:$0xff] %vm805_vm3, %v1594_v15  ;;  %v2332_v18 = vpop.f32.mrb[54].mxu0 }
 0x188   : > { %1676 = vst.msk [vmem:[%s3011_s23 + $0xb8] sm:$0xff] %vm805_vm3, %v2332_v18  ;;  %v1604_v26 = vpop.f32.mrb[55].mxu0 }
 0x189   : > { %1675 = vst.msk [vmem:[%s3011_s23 + $0xb0] sm:$0xff] %vm805_vm3, %v1604_v26  ;;  %v2335_v28 = vpop.f32.mrb[56].mxu0 }
 0x18a   : > { %1678 = vst.msk [vmem:[%s3011_s23 + $0xc8] sm:$0xff] %vm805_vm3, %v2335_v28  ;;  %v1614_v36 = vpop.f32.mrb[57].mxu0 }
 0x18b   : > { %1677 = vst.msk [vmem:[%s3011_s23 + $0xc0] sm:$0xff] %vm805_vm3, %v1614_v36  ;;  %v2338_v38 = vpop.f32.mrb[58].mxu0 }
 0x18c   : > { %1680 = vst.msk [vmem:[%s3011_s23 + $0xd8] sm:$0xff] %vm805_vm3, %v2338_v38  ;;  %v1624_v48 = vpop.f32.mrb[59].mxu0 }
 0x18d   : > { %1679 = vst.msk [vmem:[%s3011_s23 + $0xd0] sm:$0xff] %vm805_vm3, %v1624_v48  ;;  %v2341_v52 = vpop.f32.mrb[60].mxu0 }
 0x18e   : > { %1682 = vst.msk [vmem:[%s3011_s23 + $0xe8] sm:$0xff] %vm805_vm3, %v2341_v52  ;;  %v1634_v53 = vpop.f32.mrb[61].mxu0 }
 0x18f   : > { %1681 = vst.msk [vmem:[%s3011_s23 + $0xe0] sm:$0xff] %vm805_vm3, %v1634_v53 }
 0x1c6   : > { %v2179_v54 = vpop.f32.mrb[0].mxu1 }
 0x1c7   : > { %1128 = vst.msk [vmem:[%s3073_s28 + $0x8] sm:$0xff] %vm805_vm3, %v2179_v54  ;;  %v968_v56 = vpop.f32.mrb[1].mxu1 }
 0x1c8   : > { %1127 = vst.msk [vmem:[%s3073_s28] sm:$0xff] %vm805_vm3, %v968_v56 }
 0x1ca   : > { %v2182_v57 = vpop.f32.mrb[2].mxu1 }
 0x1cb   : > { %1130 = vst.msk [vmem:[%s3073_s28 + $0x18] sm:$0xff] %vm805_vm3, %v2182_v57  ;;  %v978_v60 = vpop.f32.mrb[3].mxu1 }
 0x1cc   : > { %1129 = vst.msk [vmem:[%s3073_s28 + $0x10] sm:$0xff] %vm805_vm3, %v978_v60 }
 0x1ce   : > { %v2185_v63 = vpop.f32.mrb[4].mxu1 }
 0x1cf   : > { %1132 = vst.msk [vmem:[%s3073_s28 + $0x28] sm:$0xff] %vm805_vm3, %v2185_v63  ;;  %v988_v2 = vpop.f32.mrb[5].mxu1 }
 0x1d0   : > { %1131 = vst.msk [vmem:[%s3073_s28 + $0x20] sm:$0xff] %vm805_vm3, %v988_v2 }
 0x1d2   : > { %v2188_v3 = vpop.f32.mrb[6].mxu1 }
 0x1d3   : > { %1134 = vst.msk [vmem:[%s3073_s28 + $0x38] sm:$0xff] %vm805_vm3, %v2188_v3  ;;  %v998_v4 = vpop.f32.mrb[7].mxu1 }
 0x1d4   : > { %1133 = vst.msk [vmem:[%s3073_s28 + $0x30] sm:$0xff] %vm805_vm3, %v998_v4 }
 0x1d6   : > { %v2191_v5 = vpop.f32.mrb[8].mxu1 }
 0x1d7   : > { %1136 = vst.msk [vmem:[%s3073_s28 + $0x48] sm:$0xff] %vm805_vm3, %v2191_v5  ;;  %v1008_v7 = vpop.f32.mrb[9].mxu1 }
 0x1d8   : > { %1135 = vst.msk [vmem:[%s3073_s28 + $0x40] sm:$0xff] %vm805_vm3, %v1008_v7 }
 0x1da   : > { %v2194_v9 = vpop.f32.mrb[10].mxu1 }
 0x1db   : > { %1138 = vst.msk [vmem:[%s3073_s28 + $0x58] sm:$0xff] %vm805_vm3, %v2194_v9  ;;  %v1018_v10 = vpop.f32.mrb[11].mxu1 }
 0x1dc   : > { %1137 = vst.msk [vmem:[%s3073_s28 + $0x50] sm:$0xff] %vm805_vm3, %v1018_v10 }
 0x1de   : > { %v2197_v11 = vpop.f32.mrb[12].mxu1 }
 0x1df   : > { %1140 = vst.msk [vmem:[%s3073_s28 + $0x68] sm:$0xff] %vm805_vm3, %v2197_v11  ;;  %v1028_v12 = vpop.f32.mrb[13].mxu1 }
 0x1e0   : > { %1139 = vst.msk [vmem:[%s3073_s28 + $0x60] sm:$0xff] %vm805_vm3, %v1028_v12 }
 0x1e2   : > { %v2200_v13 = vpop.f32.mrb[14].mxu1 }
 0x1e3   : > { %1142 = vst.msk [vmem:[%s3073_s28 + $0x78] sm:$0xff] %vm805_vm3, %v2200_v13  ;;  %v1038_v16 = vpop.f32.mrb[15].mxu1 }
 0x1e4   : > { %1141 = vst.msk [vmem:[%s3073_s28 + $0x70] sm:$0xff] %vm805_vm3, %v1038_v16 }
 0x1e6   : > { %v2203_v19 = vpop.f32.mrb[16].mxu1 }
 0x1e7   : > { %1144 = vst.msk [vmem:[%s3073_s28 + $0x88] sm:$0xff] %vm805_vm3, %v2203_v19  ;;  %v1048_v20 = vpop.f32.mrb[17].mxu1 }
 0x1e8   : > { %1143 = vst.msk [vmem:[%s3073_s28 + $0x80] sm:$0xff] %vm805_vm3, %v1048_v20 }
 0x1ea   : > { %v2206_v21 = vpop.f32.mrb[18].mxu1 }
 0x1eb   : > { %1146 = vst.msk [vmem:[%s3073_s28 + $0x98] sm:$0xff] %vm805_vm3, %v2206_v21  ;;  %v1058_v22 = vpop.f32.mrb[19].mxu1 }
 0x1ec   : > { %1145 = vst.msk [vmem:[%s3073_s28 + $0x90] sm:$0xff] %vm805_vm3, %v1058_v22 }
 0x1ee   : > { %v2209_v24 = vpop.f32.mrb[20].mxu1 }
 0x1ef   : > { %1148 = vst.msk [vmem:[%s3073_s28 + $0xa8] sm:$0xff] %vm805_vm3, %v2209_v24  ;;  %v1068_v27 = vpop.f32.mrb[21].mxu1 }
 0x1f0   : > { %1147 = vst.msk [vmem:[%s3073_s28 + $0xa0] sm:$0xff] %vm805_vm3, %v1068_v27 }
 0x1f2   : > { %v2212_v29 = vpop.f32.mrb[22].mxu1 }
 0x1f3   : > { %1150 = vst.msk [vmem:[%s3073_s28 + $0xb8] sm:$0xff] %vm805_vm3, %v2212_v29  ;;  %v1078_v30 = vpop.f32.mrb[23].mxu1 }
 0x1f4   : > { %1149 = vst.msk [vmem:[%s3073_s28 + $0xb0] sm:$0xff] %vm805_vm3, %v1078_v30 }
 0x1f6   : > { %v2215_v32 = vpop.f32.mrb[24].mxu1 }
 0x1f7   : > { %1152 = vst.msk [vmem:[%s3073_s28 + $0xc8] sm:$0xff] %vm805_vm3, %v2215_v32  ;;  %v1088_v34 = vpop.f32.mrb[25].mxu1 }
 0x1f8   : > { %1151 = vst.msk [vmem:[%s3073_s28 + $0xc0] sm:$0xff] %vm805_vm3, %v1088_v34 }
 0x1fa   : > { %v2218_v35 = vpop.f32.mrb[26].mxu1 }
 0x1fb   : > { %1154 = vst.msk [vmem:[%s3073_s28 + $0xd8] sm:$0xff] %vm805_vm3, %v2218_v35  ;;  %v1098_v37 = vpop.f32.mrb[27].mxu1 }
 0x1fc   : > { %1153 = vst.msk [vmem:[%s3073_s28 + $0xd0] sm:$0xff] %vm805_vm3, %v1098_v37 }
 0x1fe   : > { %v2221_v40 = vpop.f32.mrb[28].mxu1 }
 0x1ff   : > { %1156 = vst.msk [vmem:[%s3073_s28 + $0xe8] sm:$0xff] %vm805_vm3, %v2221_v40  ;;  %v1108_v42 = vpop.f32.mrb[29].mxu1 }
 0x200   : > { %1155 = vst.msk [vmem:[%s3073_s28 + $0xe0] sm:$0xff] %vm805_vm3, %v1108_v42 }
 0x202   : > { %v2224_v43 = vpop.f32.mrb[30].mxu1 }
 0x203   : > { %1158 = vst.msk [vmem:[%s3073_s28 + $0xf8] sm:$0xff] %vm805_vm3, %v2224_v43  ;;  %v1118_v44 = vpop.f32.mrb[31].mxu1 }
 0x204   : > { %1157 = vst.msk [vmem:[%s3073_s28 + $0xf0] sm:$0xff] %vm805_vm3, %v1118_v44 }
 0x206   : > { %v2235_v47 = vpop.f32.mrb[32].mxu1 }
 0x207   : > { %1389 = vst.msk [vmem:[%s3147_s9 + $0x8] sm:$0xff] %vm805_vm3, %v2235_v47  ;;  %v1229_v50 = vpop.f32.mrb[33].mxu1 }
 0x208   : > { %1388 = vst.msk [vmem:[%s3147_s9] sm:$0xff] %vm805_vm3, %v1229_v50 }
 0x20a   : > { %v2238_v55 = vpop.f32.mrb[34].mxu1 }
 0x20b   : > { %1391 = vst.msk [vmem:[%s3147_s9 + $0x18] sm:$0xff] %vm805_vm3, %v2238_v55  ;;  %v1239_v45 = vpop.f32.mrb[35].mxu1 }
 0x20c   : > { %1390 = vst.msk [vmem:[%s3147_s9 + $0x10] sm:$0xff] %vm805_vm3, %v1239_v45 }
 0x20e   : > { %v2241_v46 = vpop.f32.mrb[36].mxu1 }
 0x20f   : > { %1393 = vst.msk [vmem:[%s3147_s9 + $0x28] sm:$0xff] %vm805_vm3, %v2241_v46  ;;  %v1249_v58 = vpop.f32.mrb[37].mxu1 }
 0x210   : > { %1392 = vst.msk [vmem:[%s3147_s9 + $0x20] sm:$0xff] %vm805_vm3, %v1249_v58 }
 0x212   : > { %v2244_v61 = vpop.f32.mrb[38].mxu1 }
 0x213   : > { %1395 = vst.msk [vmem:[%s3147_s9 + $0x38] sm:$0xff] %vm805_vm3, %v2244_v61  ;;  %v1259_v0 = vpop.f32.mrb[39].mxu1 }
 0x214   : > { %1394 = vst.msk [vmem:[%s3147_s9 + $0x30] sm:$0xff] %vm805_vm3, %v1259_v0 }
 0x216   : > { %v2247_v1 = vpop.f32.mrb[40].mxu1 }
 0x217   : > { %1397 = vst.msk [vmem:[%s3147_s9 + $0x48] sm:$0xff] %vm805_vm3, %v2247_v1  ;;  %v1269_v14 = vpop.f32.mrb[41].mxu1 }
 0x218   : > { %1396 = vst.msk [vmem:[%s3147_s9 + $0x40] sm:$0xff] %vm805_vm3, %v1269_v14 }
 0x21a   : > { %v2250_v17 = vpop.f32.mrb[42].mxu1 }
 0x21b   : > { %1399 = vst.msk [vmem:[%s3147_s9 + $0x58] sm:$0xff] %vm805_vm3, %v2250_v17  ;;  %v1279_v23 = vpop.f32.mrb[43].mxu1 }
 0x21c   : > { %1398 = vst.msk [vmem:[%s3147_s9 + $0x50] sm:$0xff] %vm805_vm3, %v1279_v23 }
 0x21e   : > { %v2253_v25 = vpop.f32.mrb[44].mxu1 }
 0x21f   : > { %1401 = vst.msk [vmem:[%s3147_s9 + $0x68] sm:$0xff] %vm805_vm3, %v2253_v25  ;;  %v1289_v31 = vpop.f32.mrb[45].mxu1 }
 0x220   : > { %1400 = vst.msk [vmem:[%s3147_s9 + $0x60] sm:$0xff] %vm805_vm3, %v1289_v31 }
 0x222   : > { %v2256_v33 = vpop.f32.mrb[46].mxu1 }
 0x223   : > { %1403 = vst.msk [vmem:[%s3147_s9 + $0x78] sm:$0xff] %vm805_vm3, %v2256_v33  ;;  %v1299_v39 = vpop.f32.mrb[47].mxu1 }
 0x224   : > { %1402 = vst.msk [vmem:[%s3147_s9 + $0x70] sm:$0xff] %vm805_vm3, %v1299_v39 }
 0x226   : > { %v2259_v41 = vpop.f32.mrb[48].mxu1 }
 0x227   : > { %1405 = vst.msk [vmem:[%s3147_s9 + $0x88] sm:$0xff] %vm805_vm3, %v2259_v41  ;;  %v1309_v49 = vpop.f32.mrb[49].mxu1 }
 0x228   : > { %1404 = vst.msk [vmem:[%s3147_s9 + $0x80] sm:$0xff] %vm805_vm3, %v1309_v49 }
 0x22a   : > { %v2262_v51 = vpop.f32.mrb[50].mxu1 }
 0x22b   : > { %1407 = vst.msk [vmem:[%s3147_s9 + $0x98] sm:$0xff] %vm805_vm3, %v2262_v51  ;;  %v1319_v59 = vpop.f32.mrb[51].mxu1 }
 0x22c   : > { %1406 = vst.msk [vmem:[%s3147_s9 + $0x90] sm:$0xff] %vm805_vm3, %v1319_v59 }
 0x22e   : > { %v2265_v62 = vpop.f32.mrb[52].mxu1 }
 0x22f   : > { %1409 = vst.msk [vmem:[%s3147_s9 + $0xa8] sm:$0xff] %vm805_vm3, %v2265_v62  ;;  %v1329_v6 = vpop.f32.mrb[53].mxu1 }
 0x230   : > { %1408 = vst.msk [vmem:[%s3147_s9 + $0xa0] sm:$0xff] %vm805_vm3, %v1329_v6 }
 0x232   : > { %v2268_v8 = vpop.f32.mrb[54].mxu1 }
 0x233   : > { %1411 = vst.msk [vmem:[%s3147_s9 + $0xb8] sm:$0xff] %vm805_vm3, %v2268_v8  ;;  %v1339_v15 = vpop.f32.mrb[55].mxu1 }
 0x234   : > { %1410 = vst.msk [vmem:[%s3147_s9 + $0xb0] sm:$0xff] %vm805_vm3, %v1339_v15 }
 0x236   : > { %v2271_v18 = vpop.f32.mrb[56].mxu1 }
 0x237   : > { %1413 = vst.msk [vmem:[%s3147_s9 + $0xc8] sm:$0xff] %vm805_vm3, %v2271_v18  ;;  %v1349_v26 = vpop.f32.mrb[57].mxu1 }
 0x238   : > { %1412 = vst.msk [vmem:[%s3147_s9 + $0xc0] sm:$0xff] %vm805_vm3, %v1349_v26 }
 0x23a   : > { %v2274_v28 = vpop.f32.mrb[58].mxu1 }
 0x23b   : > { %1415 = vst.msk [vmem:[%s3147_s9 + $0xd8] sm:$0xff] %vm805_vm3, %v2274_v28  ;;  %v1359_v36 = vpop.f32.mrb[59].mxu1 }
 0x23c   : > { %1414 = vst.msk [vmem:[%s3147_s9 + $0xd0] sm:$0xff] %vm805_vm3, %v1359_v36 }
 0x23e   : > { %v2277_v38 = vpop.f32.mrb[60].mxu1 }
 0x23f   : > { %1417 = vst.msk [vmem:[%s3147_s9 + $0xe8] sm:$0xff] %vm805_vm3, %v2277_v38  ;;  %v1369_v48 = vpop.f32.mrb[61].mxu1 }
 0x240   : > { %1416 = vst.msk [vmem:[%s3147_s9 + $0xe0] sm:$0xff] %vm805_vm3, %v1369_v48 }
 0x242   : > { %v2280_v52 = vpop.f32.mrb[62].mxu1 }
 0x243   : > { %1419 = vst.msk [vmem:[%s3147_s9 + $0xf8] sm:$0xff] %vm805_vm3, %v2280_v52  ;;  %v1379_v53 = vpop.f32.mrb[63].mxu1 }
 0x244   : > { %1418 = vst.msk [vmem:[%s3147_s9 + $0xf0] sm:$0xff] %vm805_vm3, %v1379_v53 }
 0x246   : > { %v2344_v54 = vpop.f32.mrb[64].mxu1 }
 0x247   : > { %1684 = vst.msk [vmem:[%s3011_s23 + $0xf8] sm:$0xff] %vm805_vm3, %v2344_v54  ;;  %v1644_v56 = vpop.f32.mrb[65].mxu1 }
 0x248   : > { %1683 = vst.msk [vmem:[%s3011_s23 + $0xf0] sm:$0xff] %vm805_vm3, %v1644_v56 }
 0x249 PF: > { %s19_s27 = sadd.s32 1, %s2415_s27  }
 0x24a   : > { %p16_p4 = scmp.ge.s32.totalorder %s19_s27, 4  }
 0x24c   :  { %18 = sbr.rel (!%p16_p4) target bundleno = 1 (0x1), region = 98 }

</bundles_post_ra>
